<compile_context>
chip_gen: v7x
topology: tpu7x:2x2x1
jax: 0.10.0
libtpu: 0.0.40
codegen_flags: <defaults>
</compile_context>

<pallas_src>
import jax
import jax.numpy as jnp
from jax import lax
from jax.experimental import pallas as pl
from jax.experimental.pallas import tpu as pltpu


def _round_up(x, m):
    return ((x + m - 1) // m) * m


def bert_att_output_kernel(h_ref, x_ref, w_ref, p_ref, o_ref):
    # Dense: y = h @ W_t + b  (W_t already in (in, out) layout).
    # Native-dtype MXU operands, f32 accumulation.
    y = jnp.dot(h_ref[...], w_ref[...], preferred_element_type=jnp.float32)
    # Bias + residual in f32.
    y = y + p_ref[0:1, :] + x_ref[...].astype(jnp.float32)

    # Dropout: inference mode -> identity.
    # TODO(synk): training-mode dropout (pltpu.prng_random_bits mask) not enabled here.

    # LayerNorm over the hidden (last) axis, eps=1e-12, f32 math.
    # One-pass statistics: a single pair of cross-lane reductions, and no
    # `centered` temporary kept alive across a second reduction.
    mean = jnp.mean(y, axis=-1, keepdims=True)
    mean_sq = jnp.mean(y * y, axis=-1, keepdims=True)
    var = mean_sq - mean * mean
    inv = lax.rsqrt(var + 1e-12)
    gamma = p_ref[1:2, :]
    beta = p_ref[2:3, :]
    o_ref[...] = ((y - mean) * (inv * gamma) + beta).astype(o_ref.dtype)


def bert_att_output(hidden_states, input_tensor, weight, bias, gamma, beta, *, tm=512):
    """hidden_states, input_tensor: [M, H]; weight: [H, H] in PyTorch (out, in)
    layout; bias/gamma/beta: [H]. Returns [M, H] in hidden_states.dtype."""
    M, H = hidden_states.shape
    act_dtype = hidden_states.dtype

    # One-time wrapper-side prep (single XLA ops, outside the grid loop):
    #  * transpose the (out, in) weight to (in, out) -> plain contraction in kernel,
    #  * match the weight dtype to the activations (bf16 acts -> bf16 MXU path),
    #  * pack bias/gamma/beta into one f32 (3, H) slab: one DMA, one BlockSpec.
    w_t = weight.T.astype(act_dtype)
    params = jnp.stack([bias, gamma, beta], axis=0).astype(jnp.float32)

    # Row tile: multiple of 8 (sublane). For small M, split into >= 2 grid
    # steps so both v7x TensorCores get work. No activation padding (see header).
    tm_eff = tm if M >= 2 * tm else min(tm, _round_up(pl.cdiv(M, 2), 8))
    tm_eff = max(tm_eff, 8)
    grid = (pl.cdiv(M, tm_eff),)

    act_isz = jnp.dtype(act_dtype).itemsize
    w_isz = jnp.dtype(w_t.dtype).itemsize
    # VMEM estimate: resident (single-buffered) weight + double-buffered
    # h/x/out tiles + f32 LN intermediates + params slab. Cap at 48 MiB so we
    # never request all of a v7x TensorCore's 64 MiB.
    vmem_est = (H * H * w_isz
                + 2 * 3 * tm_eff * H * act_isz
                + 3 * tm_eff * H * 4
                + 2 * 3 * H * 4)
    vmem_limit = int(min(max(vmem_est + (4 << 20), 32 << 20), 48 << 20))

    cost = pl.CostEstimate(
        flops=2 * M * H * H,
        transcendentals=0,
        bytes_accessed=3 * M * H * act_isz + H * H * w_isz + 3 * H * 4,
    )

    def _run(weight_spec):
        return pl.pallas_call(
            bert_att_output_kernel,
            out_shape=jax.ShapeDtypeStruct((M, H), act_dtype),
            grid_spec=pltpu.PrefetchScalarGridSpec(
                num_scalar_prefetch=0,
                grid=grid,
                in_specs=[
                    pl.BlockSpec((tm_eff, H), lambda i: (i, 0)),  # hidden_states tile
                    pl.BlockSpec((tm_eff, H), lambda i: (i, 0)),  # residual tile
                    weight_spec,                                  # (H, H) weight, constant index
                    pl.BlockSpec((3, H), lambda i: (0, 0)),       # bias/gamma/beta slab
                ],
                out_specs=pl.BlockSpec((tm_eff, H), lambda i: (i, 0)),
            ),
            compiler_params=pltpu.CompilerParams(
                dimension_semantics=("parallel",),
                vmem_limit_bytes=vmem_limit,
            ),
            cost_estimate=cost,
        )(hidden_states, input_tensor, w_t, params)

    # The weight's index_map is constant, so a second pipeline buffer is pure
    # VMEM waste (matters on v7x's 64 MiB VMEM). Prefer single-buffering; fall
    # back to the default spec if this Pallas build rejects Buffered(1).
    try:
        return _run(pl.BlockSpec((H, H), lambda i: (0, 0),
                                 pipeline_mode=pl.Buffered(1)))
    except Exception:
        return _run(pl.BlockSpec((H, H), lambda i: (0, 0)))


def reference(hidden_states, input_tensor, weight, bias, gamma, beta):
    y = hidden_states @ weight.T + bias
    y = y + input_tensor
    mean = jnp.mean(y, axis=-1, keepdims=True)
    var = jnp.mean((y - mean) ** 2, axis=-1, keepdims=True)
    return (y - mean) / jnp.sqrt(var + 1e-12) * gamma + beta


if __name__ == "__main__":
    # --- Test 1: tiny f32 shape implied by the module (batch=2, seq=8, hidden=32) ---
    batch, seq, hidden = 2, 8, 32
    key = jax.random.PRNGKey(0)
    k1, k2, k3, k4 = jax.random.split(key, 4)

    hidden_states = jax.random.normal(k1, (batch, seq, hidden), dtype=jnp.float32)
    input_tensor = jax.random.normal(k2, (batch, seq, hidden), dtype=jnp.float32)
    bound = 1.0 / (hidden ** 0.5)
    weight = jax.random.uniform(k3, (hidden, hidden), minval=-bound, maxval=bound, dtype=jnp.float32)
    bias = jax.random.uniform(k4, (hidden,), minval=-bound, maxval=bound, dtype=jnp.float32)
    gamma = jnp.ones((hidden,), dtype=jnp.float32)
    beta = jnp.zeros((hidden,), dtype=jnp.float32)

    h2 = hidden_states.reshape(batch * seq, hidden)
    x2 = input_tensor.reshape(batch * seq, hidden)
    out = bert_att_output(h2, x2, weight, bias, gamma, beta)
    out = jax.block_until_ready(out).reshape(batch, seq, hidden)
    ref = reference(hidden_states, input_tensor, weight, bias, gamma, beta)
    assert jnp.allclose(out, ref, atol=2e-5, rtol=2e-5), "f32 mismatch vs reference"

    # --- Test 2: bf16, multi-tile, ragged-M path (M=272 not a multiple of tm=128) ---
    M2, H2 = 272, 256
    kk = jax.random.split(jax.random.PRNGKey(0), 6)
    h32 = jax.random.normal(kk[0], (M2, H2), dtype=jnp.float32)
    x32 = jax.random.normal(kk[1], (M2, H2), dtype=jnp.float32)
    b2 = 1.0 / (H2 ** 0.5)
    w32 = jax.random.uniform(kk[2], (H2, H2), minval=-b2, maxval=b2, dtype=jnp.float32)
    bi32 = jax.random.uniform(kk[3], (H2,), minval=-b2, maxval=b2, dtype=jnp.float32)
    g32 = 1.0 + 0.1 * jax.random.normal(kk[4], (H2,), dtype=jnp.float32)
    be32 = 0.1 * jax.random.normal(kk[5], (H2,), dtype=jnp.float32)

    hb = h32.astype(jnp.bfloat16)
    xb = x32.astype(jnp.bfloat16)
    wb = w32.astype(jnp.bfloat16)

    out_b = bert_att_output(hb, xb, wb, bi32, g32, be32, tm=128)
    out_b = jax.block_until_ready(out_b).astype(jnp.float32)
    ref_b = reference(hb.astype(jnp.float32), xb.astype(jnp.float32),
                      wb.astype(jnp.float32), bi32, g32, be32)
    assert jnp.allclose(out_b, ref_b, atol=1e-1, rtol=5e-2), "bf16 mismatch vs reference"

    print("KERNEL_OK")
</pallas_src>

<mosaic_0001>
module attributes {stable_mosaic.version = 11 : i64} {
  func.func @bert_att_output_kernel(%arg0: i32, %arg1: memref<8x32xf32, #tpu.memory_space<vmem>>, %arg2: memref<8x32xf32, #tpu.memory_space<vmem>>, %arg3: memref<32x32xf32, #tpu.memory_space<vmem>>, %arg4: memref<3x32xf32, #tpu.memory_space<vmem>>, %arg5: memref<8x32xf32, #tpu.memory_space<vmem>>) attributes {dimension_semantics = [#tpu.dimension_semantics<parallel>], iteration_bounds = array<i64: 2>, scalar_prefetch = 0 : i64, scratch_operands = 0 : i64, tpu.core_type = #tpu.core_type<tc>, window_params = [{transform_indices = @transform_0, window_bounds = array<i64: 8, 32>}, {transform_indices = @transform_1, window_bounds = array<i64: 8, 32>}, {pipeline_mode = #tpu.pipeline_mode<synchronous>, transform_indices = @transform_2, window_bounds = array<i64: 32, 32>}, {pipeline_mode = #tpu.pipeline_mode<synchronous>, transform_indices = @transform_3, window_bounds = array<i64: 3, 32>}, {transform_indices = @transform_4, window_bounds = array<i64: 8, 32>}]} {
    %c0 = arith.constant 0 : index
    %c0_0 = arith.constant 0 : index
    %0 = vector.load %arg1[%c0, %c0_0] : memref<8x32xf32, #tpu.memory_space<vmem>>, vector<8x32xf32>
    %c0_1 = arith.constant 0 : index
    %c0_2 = arith.constant 0 : index
    %1 = vector.load %arg3[%c0_1, %c0_2] : memref<32x32xf32, #tpu.memory_space<vmem>>, vector<32x32xf32>
    %cst = arith.constant dense<0.000000e+00> : vector<8x32xf32>
    %2 = tpu.matmul %0, %1, %cst {dimension_numbers = #tpu.dot_dimension_numbers<[1], [0], [0], [1], [0, 0, 1, 1], [], []>} : vector<8x32xf32>, vector<32x32xf32>, vector<8x32xf32> -> vector<8x32xf32>
    %c0_3 = arith.constant 0 : index
    %c0_4 = arith.constant 0 : index
    %3 = vector.load %arg4[%c0_3, %c0_4] : memref<3x32xf32, #tpu.memory_space<vmem>>, vector<1x32xf32>
    %4 = vector.broadcast %3 : vector<1x32xf32> to vector<8x32xf32>
    %5 = arith.addf %2, %4 : vector<8x32xf32>
    %c0_5 = arith.constant 0 : index
    %c0_6 = arith.constant 0 : index
    %6 = vector.load %arg2[%c0_5, %c0_6] : memref<8x32xf32, #tpu.memory_space<vmem>>, vector<8x32xf32>
    %7 = arith.addf %5, %6 : vector<8x32xf32>
    %cst_7 = arith.constant dense<0.000000e+00> : vector<8xf32>
    %8 = vector.multi_reduction <add>, %7, %cst_7 [1] : vector<8x32xf32> to vector<8xf32>
    %9 = vector.shape_cast %8 : vector<8xf32> to vector<8x1xf32>
    %cst_8 = arith.constant 3.200000e+01 : f32
    %10 = vector.broadcast %cst_8 : f32 to vector<8x1xf32>
    %11 = arith.divf %9, %10 : vector<8x1xf32>
    %12 = arith.mulf %7, %7 : vector<8x32xf32>
    %cst_9 = arith.constant dense<0.000000e+00> : vector<8xf32>
    %13 = vector.multi_reduction <add>, %12, %cst_9 [1] : vector<8x32xf32> to vector<8xf32>
    %14 = vector.shape_cast %13 : vector<8xf32> to vector<8x1xf32>
    %cst_10 = arith.constant 3.200000e+01 : f32
    %15 = vector.broadcast %cst_10 : f32 to vector<8x1xf32>
    %16 = arith.divf %14, %15 : vector<8x1xf32>
    %17 = arith.mulf %11, %11 : vector<8x1xf32>
    %18 = arith.subf %16, %17 : vector<8x1xf32>
    %cst_11 = arith.constant 9.99999996E-13 : f32
    %19 = vector.broadcast %cst_11 : f32 to vector<8x1xf32>
    %20 = arith.addf %18, %19 : vector<8x1xf32>
    %21 = math.rsqrt %20 : vector<8x1xf32>
    %c1 = arith.constant 1 : index
    %c0_12 = arith.constant 0 : index
    %22 = vector.load %arg4[%c1, %c0_12] : memref<3x32xf32, #tpu.memory_space<vmem>>, vector<1x32xf32>
    %c2 = arith.constant 2 : index
    %c0_13 = arith.constant 0 : index
    %23 = vector.load %arg4[%c2, %c0_13] : memref<3x32xf32, #tpu.memory_space<vmem>>, vector<1x32xf32>
    %24 = vector.broadcast %11 : vector<8x1xf32> to vector<8x32xf32>
    %25 = arith.subf %7, %24 : vector<8x32xf32>
    %26 = vector.broadcast %21 : vector<8x1xf32> to vector<8x32xf32>
    %27 = vector.broadcast %22 : vector<1x32xf32> to vector<8x32xf32>
    %28 = arith.mulf %26, %27 : vector<8x32xf32>
    %29 = arith.mulf %25, %28 : vector<8x32xf32>
    %30 = vector.broadcast %23 : vector<1x32xf32> to vector<8x32xf32>
    %31 = arith.addf %29, %30 : vector<8x32xf32>
    %c0_14 = arith.constant 0 : index
    %c0_15 = arith.constant 0 : index
    %32 = vector.load %arg5[%c0_14, %c0_15] : memref<8x32xf32, #tpu.memory_space<vmem>>, vector<8x32xf32>
    tpu.vector_store %arg5[%c0_14, %c0_15], %31 {strides = array<i32>} : memref<8x32xf32, #tpu.memory_space<vmem>>, vector<8x32xf32>,
    return
  }
  func.func @transform_0(%arg0: i32) -> (i32, i32) {
    %c0_i32 = arith.constant 0 : i32
    %c0_i32_0 = arith.constant 0 : i32
    return %arg0, %c0_i32 : i32, i32
  }
  func.func @transform_1(%arg0: i32) -> (i32, i32) {
    %c0_i32 = arith.constant 0 : i32
    %c0_i32_0 = arith.constant 0 : i32
    return %arg0, %c0_i32 : i32, i32
  }
  func.func @transform_2(%arg0: i32) -> (i32, i32) {
    %c0_i32 = arith.constant 0 : i32
    %c0_i32_0 = arith.constant 0 : i32
    %c0_i32_1 = arith.constant 0 : i32
    return %c0_i32, %c0_i32_0 : i32, i32
  }
  func.func @transform_3(%arg0: i32) -> (i32, i32) {
    %c0_i32 = arith.constant 0 : i32
    %c0_i32_0 = arith.constant 0 : i32
    %c0_i32_1 = arith.constant 0 : i32
    return %c0_i32, %c0_i32_0 : i32, i32
  }
  func.func @transform_4(%arg0: i32) -> (i32, i32) {
    %c0_i32 = arith.constant 0 : i32
    %c0_i32_0 = arith.constant 0 : i32
    return %arg0, %c0_i32 : i32, i32
  }
}

module attributes {stable_mosaic.version = 11 : i64} {
  func.func @bert_att_output_kernel(%arg0: i32, %arg1: memref<8x32xf32, #tpu.memory_space<vmem>>, %arg2: memref<8x32xf32, #tpu.memory_space<vmem>>, %arg3: memref<32x32xf32, #tpu.memory_space<vmem>>, %arg4: memref<3x32xf32, #tpu.memory_space<vmem>>, %arg5: memref<8x32xf32, #tpu.memory_space<vmem>>) attributes {dimension_semantics = [#tpu.dimension_semantics<parallel>], iteration_bounds = array<i64: 2>, scalar_prefetch = 0 : i64, scratch_operands = 0 : i64, tpu.core_type = #tpu.core_type<tc>, window_params = [{transform_indices = @transform_0, window_bounds = array<i64: 8, 32>}, {transform_indices = @transform_1, window_bounds = array<i64: 8, 32>}, {pipeline_mode = #tpu.pipeline_mode<synchronous>, transform_indices = @transform_2, window_bounds = array<i64: 32, 32>}, {pipeline_mode = #tpu.pipeline_mode<synchronous>, transform_indices = @transform_3, window_bounds = array<i64: 3, 32>}, {transform_indices = @transform_4, window_bounds = array<i64: 8, 32>}]} {
    %c0 = arith.constant 0 : index
    %c0_0 = arith.constant 0 : index
    %0 = vector.load %arg1[%c0, %c0_0] : memref<8x32xf32, #tpu.memory_space<vmem>>, vector<8x32xf32>
    %c0_1 = arith.constant 0 : index
    %c0_2 = arith.constant 0 : index
    %1 = vector.load %arg3[%c0_1, %c0_2] : memref<32x32xf32, #tpu.memory_space<vmem>>, vector<32x32xf32>
    %cst = arith.constant dense<0.000000e+00> : vector<8x32xf32>
    %2 = tpu.matmul %0, %1, %cst {dimension_numbers = #tpu.dot_dimension_numbers<[1], [0], [0], [1], [0, 0, 1, 1], [], []>} : vector<8x32xf32>, vector<32x32xf32>, vector<8x32xf32> -> vector<8x32xf32>
    %c0_3 = arith.constant 0 : index
    %c0_4 = arith.constant 0 : index
    %3 = vector.load %arg4[%c0_3, %c0_4] : memref<3x32xf32, #tpu.memory_space<vmem>>, vector<1x32xf32>
    %4 = vector.broadcast %3 : vector<1x32xf32> to vector<8x32xf32>
    %5 = arith.addf %2, %4 : vector<8x32xf32>
    %c0_5 = arith.constant 0 : index
    %c0_6 = arith.constant 0 : index
    %6 = vector.load %arg2[%c0_5, %c0_6] : memref<8x32xf32, #tpu.memory_space<vmem>>, vector<8x32xf32>
    %7 = arith.addf %5, %6 : vector<8x32xf32>
    %cst_7 = arith.constant dense<0.000000e+00> : vector<8xf32>
    %8 = vector.multi_reduction <add>, %7, %cst_7 [1] : vector<8x32xf32> to vector<8xf32>
    %9 = vector.shape_cast %8 : vector<8xf32> to vector<8x1xf32>
    %cst_8 = arith.constant 3.200000e+01 : f32
    %10 = vector.broadcast %cst_8 : f32 to vector<8x1xf32>
    %11 = arith.divf %9, %10 : vector<8x1xf32>
    %12 = arith.mulf %7, %7 : vector<8x32xf32>
    %cst_9 = arith.constant dense<0.000000e+00> : vector<8xf32>
    %13 = vector.multi_reduction <add>, %12, %cst_9 [1] : vector<8x32xf32> to vector<8xf32>
    %14 = vector.shape_cast %13 : vector<8xf32> to vector<8x1xf32>
    %cst_10 = arith.constant 3.200000e+01 : f32
    %15 = vector.broadcast %cst_10 : f32 to vector<8x1xf32>
    %16 = arith.divf %14, %15 : vector<8x1xf32>
    %17 = arith.mulf %11, %11 : vector<8x1xf32>
    %18 = arith.subf %16, %17 : vector<8x1xf32>
    %cst_11 = arith.constant 9.99999996E-13 : f32
    %19 = vector.broadcast %cst_11 : f32 to vector<8x1xf32>
    %20 = arith.addf %18, %19 : vector<8x1xf32>
    %21 = math.rsqrt %20 : vector<8x1xf32>
    %c1 = arith.constant 1 : index
    %c0_12 = arith.constant 0 : index
    %22 = vector.load %arg4[%c1, %c0_12] : memref<3x32xf32, #tpu.memory_space<vmem>>, vector<1x32xf32>
    %c2 = arith.constant 2 : index
    %c0_13 = arith.constant 0 : index
    %23 = vector.load %arg4[%c2, %c0_13] : memref<3x32xf32, #tpu.memory_space<vmem>>, vector<1x32xf32>
    %24 = vector.broadcast %11 : vector<8x1xf32> to vector<8x32xf32>
    %25 = arith.subf %7, %24 : vector<8x32xf32>
    %26 = vector.broadcast %21 : vector<8x1xf32> to vector<8x32xf32>
    %27 = vector.broadcast %22 : vector<1x32xf32> to vector<8x32xf32>
    %28 = arith.mulf %26, %27 : vector<8x32xf32>
    %29 = arith.mulf %25, %28 : vector<8x32xf32>
    %30 = vector.broadcast %23 : vector<1x32xf32> to vector<8x32xf32>
    %31 = arith.addf %29, %30 : vector<8x32xf32>
    %c0_14 = arith.constant 0 : index
    %c0_15 = arith.constant 0 : index
    %32 = vector.load %arg5[%c0_14, %c0_15] : memref<8x32xf32, #tpu.memory_space<vmem>>, vector<8x32xf32>
    tpu.vector_store %arg5[%c0_14, %c0_15], %31 {strides = array<i32>} : memref<8x32xf32, #tpu.memory_space<vmem>>, vector<8x32xf32>,
    return
  }
  func.func @transform_0(%arg0: i32) -> (i32, i32) {
    %c0_i32 = arith.constant 0 : i32
    %c0_i32_0 = arith.constant 0 : i32
    return %arg0, %c0_i32 : i32, i32
  }
  func.func @transform_1(%arg0: i32) -> (i32, i32) {
    %c0_i32 = arith.constant 0 : i32
    %c0_i32_0 = arith.constant 0 : i32
    return %arg0, %c0_i32 : i32, i32
  }
  func.func @transform_2(%arg0: i32) -> (i32, i32) {
    %c0_i32 = arith.constant 0 : i32
    %c0_i32_0 = arith.constant 0 : i32
    %c0_i32_1 = arith.constant 0 : i32
    return %c0_i32, %c0_i32_0 : i32, i32
  }
  func.func @transform_3(%arg0: i32) -> (i32, i32) {
    %c0_i32 = arith.constant 0 : i32
    %c0_i32_0 = arith.constant 0 : i32
    %c0_i32_1 = arith.constant 0 : i32
    return %c0_i32, %c0_i32_0 : i32, i32
  }
  func.func @transform_4(%arg0: i32) -> (i32, i32) {
    %c0_i32 = arith.constant 0 : i32
    %c0_i32_0 = arith.constant 0 : i32
    return %arg0, %c0_i32 : i32, i32
  }
}

</mosaic_0001>

<bundles_post_ra>
// kernel: tpu_custom_call.1
= control target key start
LH: loop header
LB: loop body
LE: loop exit
PB: predicated region body
PF: predicated region fallthrough
CT: control target
= control target key end

     0   :  { %s1053_s0 = inlined_call_operand.hbm [shape: f32[16,32], index: 0, kind: input, shape index: {}]   ;;  %s1054_s1 = inlined_call_operand.hbm [shape: f32[16,32], index: 1, kind: input, shape index: {}]   ;;  %s1055_s2 = inlined_call_operand.hbm [shape: f32[32,32], index: 2, kind: input, shape index: {}]   ;;  %s1056_s3 = inlined_call_operand.vmem [shape: f32[3,32], index: 3, kind: input, shape index: {}]   ;;  %s1057_s4 = inlined_call_operand.hbm [shape: f32[16,32], index: 4, kind: output, shape index: {}]  }
   0x1   :  { %1062 = sst [smem:[#allocation13_spill]] %s1055_s2 }
   0x2   :  { %9 = vsyncpa [#allocation3], 0 }
   0x3   :  { %11 = vsyncpa [#allocation3 + $0x1], 0 }
   0x4   :  { %12 = vsyncpa [#allocation6], 0 }
   0x5   :  { %14 = vsyncpa [#allocation6 + $0x1], 0 }
   0x6   :  { %15 = vsyncpa [#allocation4], 0 }
   0x7   :  { %17 = vsyncpa [#allocation4 + $0x1], 0  ;;  %s805_s15 = smov 0   ;;  %s807_s16 = smov 0  }
   0x8   :  { %s809_s17 = smov 0   ;;  %s811_s18 = smov 0  }
   0x9 LB: > { %s826_s19 = sadd.s32 4294967295, %s769_s18   ;;  %s495_s20 = sadd.s32 4294967294, %s769_s18   ;;  %s769_s18 = sphi %s811_s18, %s1081_s18   ;;  %s765_s17 = sphi %s809_s17, %s1080_s17   ;;  %s761_s16 = sphi %s807_s16, %s1079_s16   ;;  %s757_s15 = sphi %s805_s15, %s1078_s15  }
   0xa   : > { %p43_p0 = scmp.ne.s32.totalorder %s761_s16, %s757_s15  ;;  %p1058_p1 = scmp.eq.s32.totalorder %s826_s19, 0 }
   0xb   : > { %p141_p3 = scmp.eq.s32.totalorder %s495_s20, 1  ;;  %p496_p5 = scmp.ge.s32.totalorder %s769_s18, 1 }
   0xc   : > { %p835_p4 = por %p1058_p1, %p43_p0  ;;  %p148_p7 = scmp.lt.s32.totalorder %s769_s18, 3 }
   0xd   : > { %p840_p6 = por %p141_p3, %p43_p0  ;;  %s771_s24 = smov [#allocation7]  }
   0xe   : > { %s1063_s21 = scalar_select %p835_p4, 1, 0 }
   0xf   : > { %s1064_s22 = scalar_select %p840_p6, 1, 0 }
  0x10   : > { %p845_p8 = pnand %p496_p5, %p148_p7  ;;  %s160_s25 = sshll.u32 %s771_s24, 4  ;;  %s849_s25 = int_to_ptr.vmem [resolvable:$true] %s160_s25 }
  0x11   : > { %s861_s27 = sadd.s32 1, %s769_s18   ;;  %s30_s28 = sadd.s32 1, %s765_s17 }
  0x12   : > { %s1065_s23 = scalar_select %p845_p8, 1, 0 }
  0x13   : > { %p548_p9 = pneg %p845_p8  ;;  %s27_s29 = ssub.s32 %s769_s18, %s861_s27 }
  0x14   : > { %s1067_s2 = sld [smem:[#allocation13_spill]] }
  0x15   : > { %p856_p11 = pnand %p548_p9, %p1058_p1 }
  0x17   : > { %p609_p13 = pneg %p856_p11 }
  0x1a   : > { %s607_s6 = scalar_lea.hbm %s1067_s2, 512 }
  0x1b   : > { %p608_p12 = scmp.ne.s32.totalorder %s1067_s2, %s607_s6  ;;  %p614_p5 = scmp.lt.u32.totalorder %s607_s6, %s1067_s2 }
  0x1d   : > { %p610_p0 = pnand %p609_p13, %p608_p12 }
  0x1f   : > { %p611_p3 = pneg %p610_p0 }
  0x21   : > { %p616_p7 = pnand %p614_p5, %p611_p3 }
  0x23   : > { %619 = shalt.err (!%p616_p7)
}
  0x24   : > { %s620_s11 = scalar_lea.vmem %s849_s25, 512  ;;  %p628_p2 = scmp.lt.s32.totalorder %s849_s25, %s849_s25 }
  0x25   : > { %p621_p9 = scmp.ne.s32.totalorder %s849_s25, %s620_s11  ;;  %p629_p6 = scmp.lt.s32.totalorder %s620_s11, %s620_s11 }
  0x27   : > { %p623_p10 = pnand %p621_p9, %p609_p13  ;;  %p630_p4 = por %p629_p6, %p628_p2 }
  0x29   : > { %p624_p1 = pneg %p623_p10 }
  0x2b   : > { %p631_p8 = pnand %p630_p4, %p624_p1 }
  0x2d   : > { %634 = shalt.err (!%p631_p8)
}
  0x2e   : > { %s772_s12 = smov 128   ;;  %s773_s13 = smov 8  }
  0x2f   : > { %551 = dma.hbm_to_vmem [thread:$0]  (!%p856_p11), %s1067_s2, 512, %s849_s25, [#allocation6], %s772_s12, %s772_s12, %s773_s13  }
  0x30   : > { %p28_p2 = scmp.eq.s32.totalorder %s27_s29, 0  ;;  %p37_p1 = scmp.ne.s32.totalorder %s765_s17, %s761_s16 }
  0x31   : > { %p38_p4 = scmp.eq.s32.totalorder %s769_s18, 0  ;;  %p564_p6 = scmp.lt.s32.totalorder %s769_s18, 2 }
  0x32   : > { %s892_s24 = scalar_select %p28_p2, %s765_s17, %s30_s28  }
  0x33   : > { %p39_p8 = por %p38_p4, %p37_p1  ;;  %p1068_p10 = scmp.eq.s32.totalorder %s826_s19, 1 }
  0x34   : > { %s177_s5 = sand.u32 1, %s765_s17   ;;  %s500_s6 = sshll.u32 %s769_s18, 7 }
  0x35   : > { %p896_p12 = por %p1068_p10, %p37_p1  ;;  %s902_s7 = sshll.u32 %s177_s5, 3 }
  0x36   : > { %s907_s25 = scalar_lea.hbm %s1053_s0, %s500_s6  ;;  %s181_s28 = scalar_lea.vmem [#allocation2], %s902_s7 }
  0x37   : > { %s1069_s30 = scalar_select %p896_p12, 1, 0 }
  0x38   : > { %s188_s29 = sshll.u32 %s181_s28, 4  ;;  %p910_p11 = pnand %p564_p6, %p39_p8  ;;  %s914_s29 = int_to_ptr.vmem [resolvable:$true] %s188_s29 }
  0x39   : > { %s919_s12 = scalar_lea.hbm %s1054_s1, %s500_s6  ;;  %s178_s13 = scalar_lea.sflag [#allocation3], %s177_s5 }
  0x3a   : > { %s635_s14 = scalar_lea.hbm %s907_s25, 128  ;;  %p637_p0 = pneg %p910_p11 }
  0x3b   : > { %p636_p13 = scmp.ne.s32.totalorder %s907_s25, %s635_s14  ;;  %s640_s8 = scalar_lea.hbm %s1053_s0, 256 }
  0x3c   : > { %p641_p7 = scmp.lt.u32.totalorder %s907_s25, %s1053_s0  ;;  %p642_p9 = scmp.lt.u32.totalorder %s640_s8, %s635_s14 }
  0x3d   : > { %p638_p3 = pnand %p637_p0, %p636_p13  ;;  %p644_p1 = scmp.lt.u32.totalorder %s635_s14, %s907_s25 }
  0x3e   : > { %p643_p2 = por %p642_p9, %p641_p7 }
  0x3f   : > { %p639_p5 = pneg %p638_p3 }
  0x40   : > { %p645_p4 = por %p644_p1, %p643_p2 }
  0x42   : > { %p646_p6 = pnand %p645_p4, %p639_p5 }
  0x44   : > { %649 = shalt.err (!%p646_p6)
}
  0x45   : > { %s650_s5 = scalar_lea.vmem %s914_s29, 128  ;;  %s774_s6 = smov [#allocation2]  }
  0x46   : > { %p651_p8 = scmp.ne.s32.totalorder %s914_s29, %s650_s5  ;;  %s655_s10 = sshll.u32 %s774_s6, 4  ;;  %s656_s10 = int_to_ptr.vmem [resolvable:$false] %s655_s10 }
  0x47   : > { %s657_s2 = scalar_lea.vmem %s656_s10, 256  ;;  %p658_p3 = scmp.lt.s32.totalorder %s914_s29, %s656_s10 }
  0x48   : > { %p653_p10 = pnand %p651_p8, %p637_p0  ;;  %p659_p7 = scmp.lt.s32.totalorder %s657_s2, %s650_s5 }
  0x4a   : > { %p654_p13 = pneg %p653_p10  ;;  %p660_p9 = por %p659_p7, %p658_p3 }
  0x4c   : > { %p661_p2 = pnand %p660_p9, %p654_p13 }
  0x4e   : > { %664 = shalt.err (!%p661_p2)
}
  0x4f   : > { %555 = dma.hbm_to_vmem [thread:$0]  (!%p910_p11), %s907_s25, 128, %s914_s29, %s178_s13  }
  0x50   : > { %s195_s11 = sand.u32 1, %s769_s18   ;;  %s199_s14 = scalar_lea.vmem [#allocation5], %s902_s7 }
  0x51   : > { %s206_s20 = sshll.u32 %s199_s14, 4  ;;  %s196_s26 = scalar_lea.sflag [#allocation6], %s195_s11  ;;  %s207_s20 = int_to_ptr.vmem [resolvable:$true] %s206_s20 }
  0x52   : > { %s665_s8 = scalar_lea.hbm %s919_s12, 128  ;;  %s670_s6 = scalar_lea.hbm %s1054_s1, 256 }
  0x53   : > { %p666_p5 = scmp.ne.s32.totalorder %s919_s12, %s665_s8  ;;  %p671_p6 = scmp.lt.u32.totalorder %s919_s12, %s1054_s1 }
  0x54   : > { %p672_p8 = scmp.lt.u32.totalorder %s670_s6, %s665_s8  ;;  %p674_p13 = scmp.lt.u32.totalorder %s665_s8, %s919_s12 }
  0x55   : > { %p668_p1 = pnand %p666_p5, %p637_p0 }
  0x56   : > { %p673_p10 = por %p672_p8, %p671_p6 }
  0x57   : > { %p669_p4 = pneg %p668_p1 }
  0x58   : > { %p675_p3 = por %p674_p13, %p673_p10 }
  0x5a   : > { %p676_p7 = pnand %p675_p3, %p669_p4 }
  0x5c   : > { %679 = shalt.err (!%p676_p7)
}
  0x5d   : > { %s680_s7 = scalar_lea.vmem %s207_s20, 128  ;;  %s775_s25 = smov [#allocation5]  }
  0x5e   : > { %p681_p9 = scmp.ne.s32.totalorder %s207_s20, %s680_s7  ;;  %s685_s29 = sshll.u32 %s775_s25, 4  ;;  %s686_s29 = int_to_ptr.vmem [resolvable:$false] %s685_s29 }
  0x5f   : > { %s687_s13 = scalar_lea.vmem %s686_s29, 256  ;;  %p688_p1 = scmp.lt.s32.totalorder %s207_s20, %s686_s29 }
  0x60   : > { %p683_p2 = pnand %p681_p9, %p637_p0  ;;  %p689_p12 = scmp.lt.s32.totalorder %s687_s13, %s680_s7 }
  0x62   : > { %p684_p5 = pneg %p683_p2  ;;  %p690_p6 = por %p689_p12, %p688_p1 }
  0x64   : > { %p691_p8 = pnand %p690_p6, %p684_p5 }
  0x66   : > { %694 = shalt.err (!%p691_p8)
}
  0x67   : > { %558 = dma.hbm_to_vmem [thread:$0]  (!%p910_p11), %s919_s12, 128, %s207_s20, %s196_s26  }
  0x68   : > { %p1071_p4 = scmp.ne.s32.totalorder %s1065_s23, 0 }
  0x69   : > { %s970_s11 = sand.u32 (!%p1071_p4), 1, %s761_s16   ;;  %p1072_p12 = scmp.ne.s32.totalorder (!%p1071_p4), %s1063_s21, 0 }
  0x6a   : > { %215 = sbr.rel (%p1071_p4) target bundleno = 530 (0x212), region = 36  ;;  %s973_s14 = sshll.u32 (!%p1071_p4), %s970_s11, 3 }
  0x6b   : > { %s218_s8 = scalar_lea.sflag (!%p1071_p4), [#allocation3], %s970_s11  ;;  %s221_s28 = scalar_lea.vmem (!%p1071_p4), [#allocation2], %s973_s14 }
  0x71   : > { %740 = dma.done.wait (%p1072_p12), %s218_s8, 128  }
  0x72   : > { %742 = vsyncadd (%p1072_p12), %s218_s8, 4294967168  ;;  %s226_s23 = sand.u32 1, %s826_s19   ;;  %s230_s12 = scalar_lea.vmem [#allocation5], %s973_s14 }
  0x73   : > { %s227_s9 = scalar_lea.sflag [#allocation6], %s226_s23 }
  0x74   : > { %744 = dma.done.wait (%p1072_p12), %s227_s9, 128  }
  0x75   : > { %746 = vsyncadd (%p1072_p12), %s227_s9, 4294967168  ;;  %p1073_p11 = scmp.eq.s32.totalorder %s826_s19, 0 }
  0x77   : > { %748 = dma.done.wait (%p1073_p11), [#allocation6], 512   ;;  %p1074_p0 = pmov %p1073_p11 }
  0x78   : > { %v776_v0 = vmov 0.0|0.0   ;;  %vm777_vm0 = vmmov 0   ;;  %v778_v1 = vmov 0.0   ;;  %v265_v2 = vld [vmem:[#allocation7] sm:$0xff]  ;;  %v266_v3 = vld [vmem:[#allocation7 + $0x8] sm:$0xff]  ;;  %v267_v4 = vld [vmem:[#allocation7 + $0x10] sm:$0xff] }
  0x79   : > { %750 = vsyncadd (%p1074_p0), [#allocation6], 4294966784  ;;  %532 = vmatprep.subr.bf16.mxu0 %v776_v0  ;;  %529 = vmatprep.mubr.msk.f32.mxu0 %vm777_vm0, %v778_v1  ;;  %v533_v5 = vpack.c.bf16 %v266_v3, %v265_v2  ;;  %v268_v6 = vld [vmem:[#allocation7 + $0x18] sm:$0xff]  ;;  %v264_v8 = vld [vmem:[%s221_s28] sm:$0xff]  ;;  %vm274_vm1 = vcmask 261120   ;;  %s513_s2 = sshll.u32 %s826_s19, 7 }
  0x7a   : > { %v536_v7 = vpack.c.bf16 %v268_v6, %v267_v4  ;;  %v508_v9 = vld [vmem:[%s1056_s3] ss:$0 sm:$0xff]  ;;  %v348_v11 = vld [vmem:[%s230_s12] sm:$0xff]  ;;  %v510_v25 = vld [vmem:[%s1056_s3 + $0x1] ss:$0 sm:$0xff]  ;;  %s263_s7 = scalar_lea.vmem [#allocation8], %s973_s14  ;;  %s1008_s8 = scalar_lea.hbm %s1057_s4, %s513_s2 }
  0x7b   : > { %534 = vmatpush3.bf16.msra.mxu0 %v533_v5  ;;  %v511_v29 = vld [vmem:[%s1056_s3 + $0x2] ss:$0 sm:$0xff]  ;;  %s393_s25 = sshll.u32 %s263_s7, 4  ;;  %s380_s28 = scalar_lea.sflag [#allocation4], %s970_s11  ;;  %s1010_s25 = int_to_ptr.vmem [resolvable:$true] %s393_s25 }
  0x7c   : > { %535 = vmatprep.subr.bf16.mxu0 %v776_v0  ;;  %s695_s23 = scalar_lea.vmem %s1010_s25, 128  ;;  %p1075_p13 = scmp.ne.s32.totalorder %s1069_s30, 0 }
  0x7d   : > { %p696_p10 = scmp.ne.s32.totalorder %s1010_s25, %s695_s23  ;;  %s779_s19 = smov [#allocation8]  }
  0x7e   : > { %s699_s14 = sshll.u32 %s779_s19, 4  ;;  %s700_s14 = int_to_ptr.vmem [resolvable:$false] %s699_s14 }
  0x7f   : > { %537 = vmatpush3.bf16.msra.mxu0 %v536_v7  ;;  %p697_p3 = pnand %p696_p10, %p1075_p13  ;;  %s701_s9 = scalar_lea.vmem %s700_s14, 256 }
  0x80   : > { %p702_p9 = scmp.lt.s32.totalorder %s1010_s25, %s700_s14  ;;  %p703_p2 = scmp.lt.s32.totalorder %s701_s9, %s695_s23 }
  0x81   : > { %p698_p7 = pneg %p697_p3 }
  0x82   : > { %530 = vmatmul.mubr.msk.f32.vlgmr.msra.gmra.mrb[0].mxu0 %vm274_vm1, %v264_v8  ;;  %p704_p5 = por %p703_p2, %p702_p9 }
  0x84   : > { %p705_p1 = pnand %p704_p5, %p698_p7 }
 0x155   : > { %v344_v10 = vpop.f32.mrb[0].mxu0 }
 0x156   : > { %v345_v12 = vadd.f32 %v508_v9, %v344_v10  ;;  %v531_v13 = vpop.f32.mrb[1].mxu0 }
 0x158   : > { %v349_v14 = vadd.f32 %v348_v11, %v345_v12 }
 0x15a   : > { %v350_v15 = vsel %vm274_vm1, %v349_v14, 0.0  ;;  %v355_v16 = vmul.f32 %v349_v14, %v349_v14 }
 0x15b   : > { %351 = vadd.xlane.f32.xlu0 %v350_v15 }
 0x15c   : > { %v356_v17 = vsel %vm274_vm1, %v355_v16, 0.0 }
 0x15f   : > { %357 = vadd.xlane.f32.xlu0 %v356_v17 }
 0x1e8   : > { %v352_v18 = vpop.xlane.xlu0 %351 }
 0x1e9   : > { %v354_v19 = vmul.f32 0.03125, %v352_v18 }
 0x1eb   : > { %v360_v21 = vmul.f32 %v354_v19, %v354_v19  ;;  %v366_v27 = vsub.f32 %v349_v14, %v354_v19 }
 0x1ec   : > { %v358_v20 = vpop.xlane.xlu0 %357 }
 0x1ed   : > { %v359_v22 = vmul.f32 0.03125, %v358_v20 }
 0x1ef   : > { %v361_v23 = vsub.f32 %v359_v22, %v360_v21 }
 0x1f1   : > { %v362_v24 = vadd.f32 1e-12, %v361_v23 }
 0x1f3   : > { %605 = vrsqrt.f32 %v362_v24 }
 0x1fd   : > { %v606_v26 = vpop.eup %605 }
 0x1fe   : > { %v371_v28 = vmul.f32 %v606_v26, %v510_v25 }
 0x200   : > { %v372_v30 = vmul.f32 %v371_v28, %v366_v27 }
 0x202   : > { %v377_v31 = vadd.f32 %v511_v29, %v372_v30 }
 0x204   : > { %378 = vst.msk [vmem:[%s263_s7] sm:$0xff] %vm274_vm1, %v377_v31 }
 0x205   : > { %708 = shalt.err (!%p705_p1)
}
 0x206   : > { %s709_s11 = scalar_lea.hbm %s1008_s8, 128  ;;  %s713_s20 = scalar_lea.hbm %s1057_s4, 256 }
 0x207   : > { %p710_p6 = scmp.ne.s32.totalorder %s1008_s8, %s709_s11  ;;  %p714_p12 = scmp.lt.u32.totalorder %s1008_s8, %s1057_s4 }
 0x208   : > { %p715_p11 = scmp.lt.u32.totalorder %s713_s20, %s709_s11  ;;  %p717_p10 = scmp.lt.u32.totalorder %s709_s11, %s1008_s8 }
 0x209   : > { %p711_p8 = pnand %p710_p6, %p1075_p13 }
 0x20a   : > { %p716_p0 = por %p715_p11, %p714_p12 }
 0x20b   : > { %p712_p4 = pneg %p711_p8 }
 0x20c   : > { %p718_p3 = por %p717_p10, %p716_p0 }
 0x20e   : > { %p719_p7 = pnand %p718_p3, %p712_p4 }
 0x210   : > { %722 = shalt.err (!%p719_p7)
}
 0x211   : > { %546 = dma.vmem_to_hbm [thread:$0]  (%p1075_p13), %s1010_s25, 128, %s1008_s8, %s380_s28  }
 0x212 PF: > { %s405_s6 = sand.u32 1, %s757_s15   ;;  %p1076_p9 = scmp.ne.s32.totalorder %s1064_s22, 0 }
 0x213   : > { %p1077_p2 = scmp.ge.s32.totalorder %s769_s18, 2  ;;  %s406_s10 = scalar_lea.sflag [#allocation4], %s405_s6 }
 0x215   : > { %p560_p5 = pnand %p1077_p2, %p1076_p9 }
 0x217   : > { %752 = dma.done.wait (!%p560_p5), %s406_s10, 128  }
 0x218   : > { %754 = vsyncadd (!%p560_p5), %s406_s10, 4294967168  ;;  %p20_p1 = scmp.ge.s32.totalorder %s861_s27, 4   ;;  %s1078_s15 = smov %s761_s16 }
 0x219   : > { %s1079_s16 = smov %s765_s17  ;;  %s1080_s17 = smov %s892_s24 }
 0x21a   : > { %s1081_s18 = smov %s861_s27  ;;  %22 = sbr.rel (!%p20_p1) target bundleno = 9 (0x9), region = 98 }
 0x221   :  { %411 = vsyncpa [#allocation3], 1 }
 0x222   :  { %413 = vsyncpa [#allocation3 + $0x1], 1 }
 0x223   :  { %414 = vsyncpa [#allocation6], 1 }
 0x224   :  { %416 = vsyncpa [#allocation6 + $0x1], 1 }
 0x225   :  { %417 = vsyncpa [#allocation4], 1 }
 0x226   :  { %419 = vsyncpa [#allocation4 + $0x1], 1 }

// kernel: tpu_custom_call.1
= control target key start
LH: loop header
LB: loop body
LE: loop exit
PB: predicated region body
PF: predicated region fallthrough
CT: control target
= control target key end

     0   :  { %s1053_s0 = inlined_call_operand.hbm [shape: f32[16,32], index: 0, kind: input, shape index: {}]   ;;  %s1054_s1 = inlined_call_operand.hbm [shape: f32[16,32], index: 1, kind: input, shape index: {}]   ;;  %s1055_s2 = inlined_call_operand.hbm [shape: f32[32,32], index: 2, kind: input, shape index: {}]   ;;  %s1056_s3 = inlined_call_operand.vmem [shape: f32[3,32], index: 3, kind: input, shape index: {}]   ;;  %s1057_s4 = inlined_call_operand.hbm [shape: f32[16,32], index: 4, kind: output, shape index: {}]  }
   0x1   :  { %1062 = sst [smem:[#allocation13_spill]] %s1055_s2 }
   0x2   :  { %9 = vsyncpa [#allocation3], 0 }
   0x3   :  { %11 = vsyncpa [#allocation3 + $0x1], 0 }
   0x4   :  { %12 = vsyncpa [#allocation6], 0 }
   0x5   :  { %14 = vsyncpa [#allocation6 + $0x1], 0 }
   0x6   :  { %15 = vsyncpa [#allocation4], 0 }
   0x7   :  { %17 = vsyncpa [#allocation4 + $0x1], 0  ;;  %s805_s15 = smov 0   ;;  %s807_s16 = smov 0  }
   0x8   :  { %s809_s17 = smov 0   ;;  %s811_s18 = smov 0  }
   0x9 LB: > { %s826_s19 = sadd.s32 4294967295, %s769_s18   ;;  %s495_s20 = sadd.s32 4294967294, %s769_s18   ;;  %s769_s18 = sphi %s811_s18, %s1081_s18   ;;  %s765_s17 = sphi %s809_s17, %s1080_s17   ;;  %s761_s16 = sphi %s807_s16, %s1079_s16   ;;  %s757_s15 = sphi %s805_s15, %s1078_s15  }
   0xa   : > { %p43_p0 = scmp.ne.s32.totalorder %s761_s16, %s757_s15  ;;  %p1058_p1 = scmp.eq.s32.totalorder %s826_s19, 0 }
   0xb   : > { %p141_p3 = scmp.eq.s32.totalorder %s495_s20, 1  ;;  %p496_p5 = scmp.ge.s32.totalorder %s769_s18, 1 }
   0xc   : > { %p835_p4 = por %p1058_p1, %p43_p0  ;;  %p148_p7 = scmp.lt.s32.totalorder %s769_s18, 3 }
   0xd   : > { %p840_p6 = por %p141_p3, %p43_p0  ;;  %s771_s24 = smov [#allocation7]  }
   0xe   : > { %s1063_s21 = scalar_select %p835_p4, 1, 0 }
   0xf   : > { %s1064_s22 = scalar_select %p840_p6, 1, 0 }
  0x10   : > { %p845_p8 = pnand %p496_p5, %p148_p7  ;;  %s160_s25 = sshll.u32 %s771_s24, 4  ;;  %s849_s25 = int_to_ptr.vmem [resolvable:$true] %s160_s25 }
  0x11   : > { %s861_s27 = sadd.s32 1, %s769_s18   ;;  %s30_s28 = sadd.s32 1, %s765_s17 }
  0x12   : > { %s1065_s23 = scalar_select %p845_p8, 1, 0 }
  0x13   : > { %p548_p9 = pneg %p845_p8  ;;  %s27_s29 = ssub.s32 %s769_s18, %s861_s27 }
  0x14   : > { %s1067_s2 = sld [smem:[#allocation13_spill]] }
  0x15   : > { %p856_p11 = pnand %p548_p9, %p1058_p1 }
  0x17   : > { %p609_p13 = pneg %p856_p11 }
  0x1a   : > { %s607_s6 = scalar_lea.hbm %s1067_s2, 512 }
  0x1b   : > { %p608_p12 = scmp.ne.s32.totalorder %s1067_s2, %s607_s6  ;;  %p614_p5 = scmp.lt.u32.totalorder %s607_s6, %s1067_s2 }
  0x1d   : > { %p610_p0 = pnand %p609_p13, %p608_p12 }
  0x1f   : > { %p611_p3 = pneg %p610_p0 }
  0x21   : > { %p616_p7 = pnand %p614_p5, %p611_p3 }
  0x23   : > { %619 = shalt.err (!%p616_p7)
}
  0x24   : > { %s620_s11 = scalar_lea.vmem %s849_s25, 512  ;;  %p628_p2 = scmp.lt.s32.totalorder %s849_s25, %s849_s25 }
  0x25   : > { %p621_p9 = scmp.ne.s32.totalorder %s849_s25, %s620_s11  ;;  %p629_p6 = scmp.lt.s32.totalorder %s620_s11, %s620_s11 }
  0x27   : > { %p623_p10 = pnand %p621_p9, %p609_p13  ;;  %p630_p4 = por %p629_p6, %p628_p2 }
  0x29   : > { %p624_p1 = pneg %p623_p10 }
  0x2b   : > { %p631_p8 = pnand %p630_p4, %p624_p1 }
  0x2d   : > { %634 = shalt.err (!%p631_p8)
}
  0x2e   : > { %s772_s12 = smov 128   ;;  %s773_s13 = smov 8  }
  0x2f   : > { %551 = dma.hbm_to_vmem [thread:$0]  (!%p856_p11), %s1067_s2, 512, %s849_s25, [#allocation6], %s772_s12, %s772_s12, %s773_s13  }
  0x30   : > { %p28_p2 = scmp.eq.s32.totalorder %s27_s29, 0  ;;  %p37_p1 = scmp.ne.s32.totalorder %s765_s17, %s761_s16 }
  0x31   : > { %p38_p4 = scmp.eq.s32.totalorder %s769_s18, 0  ;;  %p564_p6 = scmp.lt.s32.totalorder %s769_s18, 2 }
  0x32   : > { %s892_s24 = scalar_select %p28_p2, %s765_s17, %s30_s28  }
  0x33   : > { %p39_p8 = por %p38_p4, %p37_p1  ;;  %p1068_p10 = scmp.eq.s32.totalorder %s826_s19, 1 }
  0x34   : > { %s177_s5 = sand.u32 1, %s765_s17   ;;  %s500_s6 = sshll.u32 %s769_s18, 7 }
  0x35   : > { %p896_p12 = por %p1068_p10, %p37_p1  ;;  %s902_s7 = sshll.u32 %s177_s5, 3 }
  0x36   : > { %s907_s25 = scalar_lea.hbm %s1053_s0, %s500_s6  ;;  %s181_s28 = scalar_lea.vmem [#allocation2], %s902_s7 }
  0x37   : > { %s1069_s30 = scalar_select %p896_p12, 1, 0 }
  0x38   : > { %s188_s29 = sshll.u32 %s181_s28, 4  ;;  %p910_p11 = pnand %p564_p6, %p39_p8  ;;  %s914_s29 = int_to_ptr.vmem [resolvable:$true] %s188_s29 }
  0x39   : > { %s919_s12 = scalar_lea.hbm %s1054_s1, %s500_s6  ;;  %s178_s13 = scalar_lea.sflag [#allocation3], %s177_s5 }
  0x3a   : > { %s635_s14 = scalar_lea.hbm %s907_s25, 128  ;;  %p637_p0 = pneg %p910_p11 }
  0x3b   : > { %p636_p13 = scmp.ne.s32.totalorder %s907_s25, %s635_s14  ;;  %s640_s8 = scalar_lea.hbm %s1053_s0, 256 }
  0x3c   : > { %p641_p7 = scmp.lt.u32.totalorder %s907_s25, %s1053_s0  ;;  %p642_p9 = scmp.lt.u32.totalorder %s640_s8, %s635_s14 }
  0x3d   : > { %p638_p3 = pnand %p637_p0, %p636_p13  ;;  %p644_p1 = scmp.lt.u32.totalorder %s635_s14, %s907_s25 }
  0x3e   : > { %p643_p2 = por %p642_p9, %p641_p7 }
  0x3f   : > { %p639_p5 = pneg %p638_p3 }
  0x40   : > { %p645_p4 = por %p644_p1, %p643_p2 }
  0x42   : > { %p646_p6 = pnand %p645_p4, %p639_p5 }
  0x44   : > { %649 = shalt.err (!%p646_p6)
}
  0x45   : > { %s650_s5 = scalar_lea.vmem %s914_s29, 128  ;;  %s774_s6 = smov [#allocation2]  }
  0x46   : > { %p651_p8 = scmp.ne.s32.totalorder %s914_s29, %s650_s5  ;;  %s655_s10 = sshll.u32 %s774_s6, 4  ;;  %s656_s10 = int_to_ptr.vmem [resolvable:$false] %s655_s10 }
  0x47   : > { %s657_s2 = scalar_lea.vmem %s656_s10, 256  ;;  %p658_p3 = scmp.lt.s32.totalorder %s914_s29, %s656_s10 }
  0x48   : > { %p653_p10 = pnand %p651_p8, %p637_p0  ;;  %p659_p7 = scmp.lt.s32.totalorder %s657_s2, %s650_s5 }
  0x4a   : > { %p654_p13 = pneg %p653_p10  ;;  %p660_p9 = por %p659_p7, %p658_p3 }
  0x4c   : > { %p661_p2 = pnand %p660_p9, %p654_p13 }
  0x4e   : > { %664 = shalt.err (!%p661_p2)
}
  0x4f   : > { %555 = dma.hbm_to_vmem [thread:$0]  (!%p910_p11), %s907_s25, 128, %s914_s29, %s178_s13  }
  0x50   : > { %s195_s11 = sand.u32 1, %s769_s18   ;;  %s199_s14 = scalar_lea.vmem [#allocation5], %s902_s7 }
  0x51   : > { %s206_s20 = sshll.u32 %s199_s14, 4  ;;  %s196_s26 = scalar_lea.sflag [#allocation6], %s195_s11  ;;  %s207_s20 = int_to_ptr.vmem [resolvable:$true] %s206_s20 }
  0x52   : > { %s665_s8 = scalar_lea.hbm %s919_s12, 128  ;;  %s670_s6 = scalar_lea.hbm %s1054_s1, 256 }
  0x53   : > { %p666_p5 = scmp.ne.s32.totalorder %s919_s12, %s665_s8  ;;  %p671_p6 = scmp.lt.u32.totalorder %s919_s12, %s1054_s1 }
  0x54   : > { %p672_p8 = scmp.lt.u32.totalorder %s670_s6, %s665_s8  ;;  %p674_p13 = scmp.lt.u32.totalorder %s665_s8, %s919_s12 }
  0x55   : > { %p668_p1 = pnand %p666_p5, %p637_p0 }
  0x56   : > { %p673_p10 = por %p672_p8, %p671_p6 }
  0x57   : > { %p669_p4 = pneg %p668_p1 }
  0x58   : > { %p675_p3 = por %p674_p13, %p673_p10 }
  0x5a   : > { %p676_p7 = pnand %p675_p3, %p669_p4 }
  0x5c   : > { %679 = shalt.err (!%p676_p7)
}
  0x5d   : > { %s680_s7 = scalar_lea.vmem %s207_s20, 128  ;;  %s775_s25 = smov [#allocation5]  }
  0x5e   : > { %p681_p9 = scmp.ne.s32.totalorder %s207_s20, %s680_s7  ;;  %s685_s29 = sshll.u32 %s775_s25, 4  ;;  %s686_s29 = int_to_ptr.vmem [resolvable:$false] %s685_s29 }
  0x5f   : > { %s687_s13 = scalar_lea.vmem %s686_s29, 256  ;;  %p688_p1 = scmp.lt.s32.totalorder %s207_s20, %s686_s29 }
  0x60   : > { %p683_p2 = pnand %p681_p9, %p637_p0  ;;  %p689_p12 = scmp.lt.s32.totalorder %s687_s13, %s680_s7 }
  0x62   : > { %p684_p5 = pneg %p683_p2  ;;  %p690_p6 = por %p689_p12, %p688_p1 }
  0x64   : > { %p691_p8 = pnand %p690_p6, %p684_p5 }
  0x66   : > { %694 = shalt.err (!%p691_p8)
}
  0x67   : > { %558 = dma.hbm_to_vmem [thread:$0]  (!%p910_p11), %s919_s12, 128, %s207_s20, %s196_s26  }
  0x68   : > { %p1071_p4 = scmp.ne.s32.totalorder %s1065_s23, 0 }
  0x69   : > { %s970_s11 = sand.u32 (!%p1071_p4), 1, %s761_s16   ;;  %p1072_p12 = scmp.ne.s32.totalorder (!%p1071_p4), %s1063_s21, 0 }
  0x6a   : > { %215 = sbr.rel (%p1071_p4) target bundleno = 530 (0x212), region = 36  ;;  %s973_s14 = sshll.u32 (!%p1071_p4), %s970_s11, 3 }
  0x6b   : > { %s218_s8 = scalar_lea.sflag (!%p1071_p4), [#allocation3], %s970_s11  ;;  %s221_s28 = scalar_lea.vmem (!%p1071_p4), [#allocation2], %s973_s14 }
  0x71   : > { %740 = dma.done.wait (%p1072_p12), %s218_s8, 128  }
  0x72   : > { %742 = vsyncadd (%p1072_p12), %s218_s8, 4294967168  ;;  %s226_s23 = sand.u32 1, %s826_s19   ;;  %s230_s12 = scalar_lea.vmem [#allocation5], %s973_s14 }
  0x73   : > { %s227_s9 = scalar_lea.sflag [#allocation6], %s226_s23 }
  0x74   : > { %744 = dma.done.wait (%p1072_p12), %s227_s9, 128  }
  0x75   : > { %746 = vsyncadd (%p1072_p12), %s227_s9, 4294967168  ;;  %p1073_p11 = scmp.eq.s32.totalorder %s826_s19, 0 }
  0x77   : > { %748 = dma.done.wait (%p1073_p11), [#allocation6], 512   ;;  %p1074_p0 = pmov %p1073_p11 }
  0x78   : > { %v776_v0 = vmov 0.0|0.0   ;;  %vm777_vm0 = vmmov 0   ;;  %v778_v1 = vmov 0.0   ;;  %v265_v2 = vld [vmem:[#allocation7] sm:$0xff]  ;;  %v266_v3 = vld [vmem:[#allocation7 + $0x8] sm:$0xff]  ;;  %v267_v4 = vld [vmem:[#allocation7 + $0x10] sm:$0xff] }
  0x79   : > { %750 = vsyncadd (%p1074_p0), [#allocation6], 4294966784  ;;  %532 = vmatprep.subr.bf16.mxu0 %v776_v0  ;;  %529 = vmatprep.mubr.msk.f32.mxu0 %vm777_vm0, %v778_v1  ;;  %v533_v5 = vpack.c.bf16 %v266_v3, %v265_v2  ;;  %v268_v6 = vld [vmem:[#allocation7 + $0x18] sm:$0xff]  ;;  %v264_v8 = vld [vmem:[%s221_s28] sm:$0xff]  ;;  %vm274_vm1 = vcmask 261120   ;;  %s513_s2 = sshll.u32 %s826_s19, 7 }
  0x7a   : > { %v536_v7 = vpack.c.bf16 %v268_v6, %v267_v4  ;;  %v508_v9 = vld [vmem:[%s1056_s3] ss:$0 sm:$0xff]  ;;  %v348_v11 = vld [vmem:[%s230_s12] sm:$0xff]  ;;  %v510_v25 = vld [vmem:[%s1056_s3 + $0x1] ss:$0 sm:$0xff]  ;;  %s263_s7 = scalar_lea.vmem [#allocation8], %s973_s14  ;;  %s1008_s8 = scalar_lea.hbm %s1057_s4, %s513_s2 }
  0x7b   : > { %534 = vmatpush3.bf16.msra.mxu0 %v533_v5  ;;  %v511_v29 = vld [vmem:[%s1056_s3 + $0x2] ss:$0 sm:$0xff]  ;;  %s393_s25 = sshll.u32 %s263_s7, 4  ;;  %s380_s28 = scalar_lea.sflag [#allocation4], %s970_s11  ;;  %s1010_s25 = int_to_ptr.vmem [resolvable:$true] %s393_s25 }
  0x7c   : > { %535 = vmatprep.subr.bf16.mxu0 %v776_v0  ;;  %s695_s23 = scalar_lea.vmem %s1010_s25, 128  ;;  %p1075_p13 = scmp.ne.s32.totalorder %s1069_s30, 0 }
  0x7d   : > { %p696_p10 = scmp.ne.s32.totalorder %s1010_s25, %s695_s23  ;;  %s779_s19 = smov [#allocation8]  }
  0x7e   : > { %s699_s14 = sshll.u32 %s779_s19, 4  ;;  %s700_s14 = int_to_ptr.vmem [resolvable:$false] %s699_s14 }
  0x7f   : > { %537 = vmatpush3.bf16.msra.mxu0 %v536_v7  ;;  %p697_p3 = pnand %p696_p10, %p1075_p13  ;;  %s701_s9 = scalar_lea.vmem %s700_s14, 256 }
  0x80   : > { %p702_p9 = scmp.lt.s32.totalorder %s1010_s25, %s700_s14  ;;  %p703_p2 = scmp.lt.s32.totalorder %s701_s9, %s695_s23 }
  0x81   : > { %p698_p7 = pneg %p697_p3 }
  0x82   : > { %530 = vmatmul.mubr.msk.f32.vlgmr.msra.gmra.mrb[0].mxu0 %vm274_vm1, %v264_v8  ;;  %p704_p5 = por %p703_p2, %p702_p9 }
  0x84   : > { %p705_p1 = pnand %p704_p5, %p698_p7 }
 0x155   : > { %v344_v10 = vpop.f32.mrb[0].mxu0 }
 0x156   : > { %v345_v12 = vadd.f32 %v508_v9, %v344_v10  ;;  %v531_v13 = vpop.f32.mrb[1].mxu0 }
 0x158   : > { %v349_v14 = vadd.f32 %v348_v11, %v345_v12 }
 0x15a   : > { %v350_v15 = vsel %vm274_vm1, %v349_v14, 0.0  ;;  %v355_v16 = vmul.f32 %v349_v14, %v349_v14 }
 0x15b   : > { %351 = vadd.xlane.f32.xlu0 %v350_v15 }
 0x15c   : > { %v356_v17 = vsel %vm274_vm1, %v355_v16, 0.0 }
 0x15f   : > { %357 = vadd.xlane.f32.xlu0 %v356_v17 }
 0x1e8   : > { %v352_v18 = vpop.xlane.xlu0 %351 }
 0x1e9   : > { %v354_v19 = vmul.f32 0.03125, %v352_v18 }
 0x1eb   : > { %v360_v21 = vmul.f32 %v354_v19, %v354_v19  ;;  %v366_v27 = vsub.f32 %v349_v14, %v354_v19 }
 0x1ec   : > { %v358_v20 = vpop.xlane.xlu0 %357 }
 0x1ed   : > { %v359_v22 = vmul.f32 0.03125, %v358_v20 }
 0x1ef   : > { %v361_v23 = vsub.f32 %v359_v22, %v360_v21 }
 0x1f1   : > { %v362_v24 = vadd.f32 1e-12, %v361_v23 }
 0x1f3   : > { %605 = vrsqrt.f32 %v362_v24 }
 0x1fd   : > { %v606_v26 = vpop.eup %605 }
 0x1fe   : > { %v371_v28 = vmul.f32 %v606_v26, %v510_v25 }
 0x200   : > { %v372_v30 = vmul.f32 %v371_v28, %v366_v27 }
 0x202   : > { %v377_v31 = vadd.f32 %v511_v29, %v372_v30 }
 0x204   : > { %378 = vst.msk [vmem:[%s263_s7] sm:$0xff] %vm274_vm1, %v377_v31 }
 0x205   : > { %708 = shalt.err (!%p705_p1)
}
 0x206   : > { %s709_s11 = scalar_lea.hbm %s1008_s8, 128  ;;  %s713_s20 = scalar_lea.hbm %s1057_s4, 256 }
 0x207   : > { %p710_p6 = scmp.ne.s32.totalorder %s1008_s8, %s709_s11  ;;  %p714_p12 = scmp.lt.u32.totalorder %s1008_s8, %s1057_s4 }
 0x208   : > { %p715_p11 = scmp.lt.u32.totalorder %s713_s20, %s709_s11  ;;  %p717_p10 = scmp.lt.u32.totalorder %s709_s11, %s1008_s8 }
 0x209   : > { %p711_p8 = pnand %p710_p6, %p1075_p13 }
 0x20a   : > { %p716_p0 = por %p715_p11, %p714_p12 }
 0x20b   : > { %p712_p4 = pneg %p711_p8 }
 0x20c   : > { %p718_p3 = por %p717_p10, %p716_p0 }
 0x20e   : > { %p719_p7 = pnand %p718_p3, %p712_p4 }
 0x210   : > { %722 = shalt.err (!%p719_p7)
}
 0x211   : > { %546 = dma.vmem_to_hbm [thread:$0]  (%p1075_p13), %s1010_s25, 128, %s1008_s8, %s380_s28  }
 0x212 PF: > { %s405_s6 = sand.u32 1, %s757_s15   ;;  %p1076_p9 = scmp.ne.s32.totalorder %s1064_s22, 0 }
 0x213   : > { %p1077_p2 = scmp.ge.s32.totalorder %s769_s18, 2  ;;  %s406_s10 = scalar_lea.sflag [#allocation4], %s405_s6 }
 0x215   : > { %p560_p5 = pnand %p1077_p2, %p1076_p9 }
 0x217   : > { %752 = dma.done.wait (!%p560_p5), %s406_s10, 128  }
 0x218   : > { %754 = vsyncadd (!%p560_p5), %s406_s10, 4294967168  ;;  %p20_p1 = scmp.ge.s32.totalorder %s861_s27, 4   ;;  %s1078_s15 = smov %s761_s16 }
 0x219   : > { %s1079_s16 = smov %s765_s17  ;;  %s1080_s17 = smov %s892_s24 }
 0x21a   : > { %s1081_s18 = smov %s861_s27  ;;  %22 = sbr.rel (!%p20_p1) target bundleno = 9 (0x9), region = 98 }
 0x221   :  { %411 = vsyncpa [#allocation3], 1 }
 0x222   :  { %413 = vsyncpa [#allocation3 + $0x1], 1 }
 0x223   :  { %414 = vsyncpa [#allocation6], 1 }
 0x224   :  { %416 = vsyncpa [#allocation6 + $0x1], 1 }
 0x225   :  { %417 = vsyncpa [#allocation4], 1 }
 0x226   :  { %419 = vsyncpa [#allocation4 + $0x1], 1 }

</bundles_post_ra>
